<compile_context>
chip_gen: v5e
topology: v5e:2x2
jax: 0.10.0
libtpu: 0.0.40
codegen_flags: <defaults>
</compile_context>

<pallas_src>
import math
from functools import partial

import jax
import jax.numpy as jnp
from jax import lax
from jax.experimental import pallas as pl
from jax.experimental.pallas import tpu as pltpu


# ----------------------------------------------------------------------------
# Parameter / buffer construction (plain JAX — mirrors __init__)
# ----------------------------------------------------------------------------
def make_positional_encoding_table(d_model: int, max_len: int,
                                   dtype=jnp.float32) -> jnp.ndarray:
    position = jnp.arange(max_len, dtype=jnp.float32)[:, None]            # (L, 1)
    div_term = jnp.exp(jnp.arange(0, d_model, 2, dtype=jnp.float32)
                       * (-math.log(10000.0) / d_model))                  # (d/2,)
    pe = jnp.zeros((max_len, d_model), jnp.float32)
    pe = pe.at[:, 0::2].set(jnp.sin(position * div_term))
    pe = pe.at[:, 1::2].set(jnp.cos(position * div_term))
    pe = jnp.transpose(pe[None, :, :], (0, 2, 1))                         # (1, d_model, max_len)
    return pe.astype(dtype)


# ----------------------------------------------------------------------------
# Pallas kernels
# ----------------------------------------------------------------------------
def _add_pe_eval_kernel(x_ref, pe_ref, o_ref):
    # eval-mode forward: dropout is identity
    o_ref[...] = x_ref[...] + pe_ref[...]          # (TB, TL) + (1, TL) broadcast


def _hash_u32(x):
    # lowbias32: xor-shift / multiply integer hash — plain VPU ops, lowers on
    # both TPU and the CPU interpreter (unlike the stateful TPU PRNG).
    x = x ^ (x >> 16)
    x = x * jnp.uint32(0x7FEB352D)
    x = x ^ (x >> 15)
    x = x * jnp.uint32(0x846CA68B)
    x = x ^ (x >> 16)
    return x


def _add_pe_train_kernel(seed_ref, x_ref, pe_ref, o_ref, *, p, n_flat, tb, tl):
    # training-mode forward: x + pe, then inverted dropout with keep-prob 1-p.
    # TODO(synk): PyTorch's dropout RNG stream cannot be reproduced bit-exactly;
    #             we use a stateless counter-based hash keyed on (seed, element).
    y = x_ref[...] + pe_ref[...]                               # (TB, TL) + (1, TL)

    b = pl.program_id(0)
    l = pl.program_id(1)
    row = lax.broadcasted_iota(jnp.int32, (tb, tl), 0).astype(jnp.uint32)
    col = lax.broadcasted_iota(jnp.int32, (tb, tl), 1).astype(jnp.uint32)
    # Global (flattened) element index -> unique RNG counter per element, so
    # dropout masks are not correlated across batch / lane tiles.
    g = ((b * tb).astype(jnp.uint32) + row) * jnp.uint32(n_flat) \
        + ((l * tl).astype(jnp.uint32) + col)
    s = seed_ref[0].astype(jnp.uint32) * jnp.uint32(0x9E3779B9)
    bits = _hash_u32(g ^ s)

    # Integer threshold compare: P(keep) = 1 - p, no float conversion needed.
    thr = jnp.uint32(min(int(round(p * 4294967296.0)), 4294967295))
    keep = bits >= thr
    scale = 1.0 / (1.0 - p)                                    # trace-time constant
    o_ref[...] = jnp.where(keep, y * scale, 0.0).astype(o_ref.dtype)


# ----------------------------------------------------------------------------
# Tiling helper
# ----------------------------------------------------------------------------
def _choose_tiles(B, N, itemsize, target_block_bytes=2 * 1024 * 1024):
    # Batch tile: keep sublanes reasonably full without padding headaches.
    if B <= 8:
        tb = B
    elif B % 8 == 0:
        tb = 8
    else:
        tb = 1
    # Lane tile: largest multiple of 128 dividing N within the ~2 MiB budget,
    # so 2 buffers x 3 arrays stays well under v5e's 16 MiB scoped default and
    # v7x's 64 MiB physical VMEM.
    if N % 128 != 0:
        return tb, N                                           # full row fallback
    max_elems = max(128, target_block_bytes // (itemsize * tb))
    if N <= max_elems:
        return tb, N
    tl = (max_elems // 128) * 128
    while tl >= 128 and N % tl != 0:
        tl -= 128
    return tb, (tl if tl >= 128 else N)


# ----------------------------------------------------------------------------
# Wrapper
# ----------------------------------------------------------------------------
def positional_encoding_forward(x, pe, *, p=0.1, training=False, seed=0):
    """Forward pass of PositionalEncoding: dropout(x + pe).

    x : (B, d_model, max_len)
    pe: (1, d_model, max_len)
    """
    B, d_model, max_len = x.shape
    assert pe.shape == (1, d_model, max_len)

    N = d_model * max_len
    xf = x.reshape(B, N)                          # contiguous -> free bitcast
    pef = pe.astype(x.dtype).reshape(1, N)        # keep pe in x's dtype

    itemsize = jnp.dtype(x.dtype).itemsize
    tb, tl = _choose_tiles(B, N, itemsize)
    grid = (B // tb, N // tl)

    out_shape = jax.ShapeDtypeStruct((B, N), x.dtype)
    cost = pl.CostEstimate(flops=B * N, transcendentals=0,
                           bytes_accessed=(2 * B * N + N) * itemsize)
    cparams = pltpu.CompilerParams(
        dimension_semantics=("parallel", "parallel"),   # RNG is stateless per element
        vmem_limit_bytes=32 * 1024 * 1024)

    if training and p > 0.0:
        grid_spec = pltpu.PrefetchScalarGridSpec(
            num_scalar_prefetch=1,
            grid=grid,
            in_specs=[
                pl.BlockSpec((tb, tl), lambda b, l, seed_r: (b, l)),   # x tile
                pl.BlockSpec((1, tl), lambda b, l, seed_r: (0, l)),    # pe: broadcast over batch
            ],
            out_specs=pl.BlockSpec((tb, tl), lambda b, l, seed_r: (b, l)),
        )
        out = pl.pallas_call(
            partial(_add_pe_train_kernel, p=float(p), n_flat=N, tb=tb, tl=tl),
            out_shape=out_shape,
            grid_spec=grid_spec,
            compiler_params=cparams,
            cost_estimate=cost,
        )(jnp.array([seed], jnp.int32), xf, pef)
    else:
        grid_spec = pltpu.PrefetchScalarGridSpec(
            num_scalar_prefetch=0,
            grid=grid,
            in_specs=[
                pl.BlockSpec((tb, tl), lambda b, l: (b, l)),
                pl.BlockSpec((1, tl), lambda b, l: (0, l)),
            ],
            out_specs=pl.BlockSpec((tb, tl), lambda b, l: (b, l)),
        )
        out = pl.pallas_call(
            _add_pe_eval_kernel,
            out_shape=out_shape,
            grid_spec=grid_spec,
            compiler_params=cparams,
            cost_estimate=cost,
        )(xf, pef)

    return out.reshape(B, d_model, max_len)


# ----------------------------------------------------------------------------
# Demo / self-check
# ----------------------------------------------------------------------------
if __name__ == "__main__":
    batch, d_model, max_len = 2, 32, 16

    key = jax.random.PRNGKey(0)
    x = jax.random.normal(key, (batch, d_model, max_len), dtype=jnp.float32)
    pe = make_positional_encoding_table(d_model, max_len, dtype=jnp.float32)

    # eval-mode forward (dropout = identity), matches PyTorch .eval() exactly
    out = positional_encoding_forward(x, pe, training=False)
    out = jax.block_until_ready(out)

    ref = x + pe
    assert out.shape == x.shape and out.dtype == x.dtype
    assert jnp.allclose(out, ref, atol=1e-6, rtol=1e-6), "mismatch vs reference"

    # also exercise the training-mode (dropout) kernel once
    out_train = positional_encoding_forward(x, pe, p=0.1, training=True, seed=42)
    out_train = jax.block_until_ready(out_train)
    # dropout sanity: every element is either 0 or (x+pe)/(1-p)
    scaled = ref / 0.9
    ok = jnp.all(jnp.isclose(out_train, 0.0, atol=1e-6)
                 | jnp.isclose(out_train, scaled, atol=1e-5))
    assert bool(ok), "dropout output not consistent with inverted-dropout semantics"

    print("KERNEL_OK")
</pallas_src>

<mosaic_0001>
module attributes {stable_mosaic.version = 11 : i64} {
  func.func @_add_pe_eval_kernel(%arg0: i32, %arg1: i32, %arg2: memref<2x512xf32, #tpu.memory_space<vmem>>, %arg3: memref<1x512xf32, #tpu.memory_space<vmem>>, %arg4: memref<2x512xf32, #tpu.memory_space<vmem>>) attributes {dimension_semantics = [#tpu.dimension_semantics<parallel>, #tpu.dimension_semantics<parallel>], iteration_bounds = array<i64: 1, 1>, scalar_prefetch = 0 : i64, scratch_operands = 0 : i64, tpu.core_type = #tpu.core_type<tc>, window_params = [{transform_indices = @transform_0, window_bounds = array<i64: 2, 512>}, {transform_indices = @transform_1, window_bounds = array<i64: 1, 512>}, {transform_indices = @transform_2, window_bounds = array<i64: 2, 512>}]} {
    %c0 = arith.constant 0 : index
    %c0_0 = arith.constant 0 : index
    %0 = vector.load %arg2[%c0, %c0_0] : memref<2x512xf32, #tpu.memory_space<vmem>>, vector<2x512xf32>
    %c0_1 = arith.constant 0 : index
    %c0_2 = arith.constant 0 : index
    %1 = vector.load %arg3[%c0_1, %c0_2] : memref<1x512xf32, #tpu.memory_space<vmem>>, vector<1x512xf32>
    %2 = vector.broadcast %1 : vector<1x512xf32> to vector<2x512xf32>
    %3 = arith.addf %0, %2 : vector<2x512xf32>
    %c0_3 = arith.constant 0 : index
    %c0_4 = arith.constant 0 : index
    %4 = vector.load %arg4[%c0_3, %c0_4] : memref<2x512xf32, #tpu.memory_space<vmem>>, vector<2x512xf32>
    tpu.vector_store %arg4[%c0_3, %c0_4], %3 {strides = array<i32>} : memref<2x512xf32, #tpu.memory_space<vmem>>, vector<2x512xf32>,
    return
  }
  func.func @transform_0(%arg0: i32, %arg1: i32) -> (i32, i32) {
    %c0_i32 = arith.constant 0 : i32
    return %arg0, %arg1 : i32, i32
  }
  func.func @transform_1(%arg0: i32, %arg1: i32) -> (i32, i32) {
    %c0_i32 = arith.constant 0 : i32
    %c0_i32_0 = arith.constant 0 : i32
    return %c0_i32, %arg1 : i32, i32
  }
  func.func @transform_2(%arg0: i32, %arg1: i32) -> (i32, i32) {
    %c0_i32 = arith.constant 0 : i32
    return %arg0, %arg1 : i32, i32
  }
}

</mosaic_0001>

<bundles_post_ra>
// kernel: tpu_custom_call.1
= control target key start
LH: loop header
LB: loop body
LE: loop exit
PB: predicated region body
PF: predicated region fallthrough
CT: control target
= control target key end

     0   :  { %7 = vsyncpa [#allocation3], 0  ;;  %s185_s0 = inlined_call_operand.hbm [shape: f32[2,512], index: 0, kind: input, shape index: {}]   ;;  %s186_s1 = inlined_call_operand.hbm [shape: f32[1,512], index: 1, kind: input, shape index: {}]   ;;  %s187_s2 = inlined_call_operand.hbm [shape: f32[2,512], index: 2, kind: output, shape index: {}]  }
   0x1   :  { %8 = vsyncpa [#allocation6], 0 }
   0x2   :  { %9 = vsyncpa [#allocation4], 0  ;;  %s15_s11 = sshll.u32 %s185_s0, 4  ;;  %s158_s12 = smov [#allocation2]   ;;  %s16_s11 = int_to_ptr.hbm [resolvable:$true] %s15_s11 }
   0x3   :  { %s17_s13 = sshll.u32 %s158_s12, 4  ;;  %s26_s16 = sshll.u32 %s186_s1, 4  ;;  %s18_s13 = int_to_ptr.vmem [resolvable:$true] %s17_s13  ;;  %s27_s16 = int_to_ptr.hbm [resolvable:$true] %s26_s16 }
   0x4   :  { %20 = dma.hbm_to_vmem [thread:$0]  %s16_s11, 128, %s18_s13, [#allocation3]  }
   0x5   :  { %s159_s17 = smov [#allocation5]  }
   0x6   :  { %s28_s18 = sshll.u32 %s159_s17, 4  ;;  %s29_s18 = int_to_ptr.vmem [resolvable:$true] %s28_s18 }
   0x7   :  { %31 = dma.hbm_to_vmem [thread:$0]  %s27_s16, 64, %s29_s18, [#allocation6]  }
   0x8   :  { %152 = dma.done.wait [#allocation3], 128  }
   0x9   :  { %153 = vsyncadd [#allocation3], 4294967168 }
   0xa   :  { %154 = dma.done.wait [#allocation6], 64  }
   0xb   :  { %155 = vsyncadd [#allocation6], 4294967232  ;;  %v41_v0 = vld [vmem:[#allocation5] sm:$0xf]  ;;  %vm50_vm0 = vcmask 1041408   ;;  %vm52_vm1 = vcmask 1045508  }
   0xc   :  { %v43_v1 = vperm.slane %v41_v0, 0  ;;  %v44_v2 = vperm.slane %v41_v0, 1  ;;  %v45_v3 = vperm.slane %v41_v0, 2  ;;  %v46_v4 = vperm.slane %v41_v0, 3  ;;  %v40_v8 = vld [vmem:[#allocation2] sm:$0xff]  ;;  %s160_s0 = smov [#allocation7]  }
   0xd   :  { %vm54_vm2 = vcmask 1043456   ;;  %s64_s1 = sshll.u32 %s160_s0, 4  ;;  %s66_s21 = sshll.u32 %s187_s2, 4  ;;  %s65_s1 = int_to_ptr.vmem [resolvable:$true] %s64_s1  ;;  %s67_s21 = int_to_ptr.hbm [resolvable:$true] %s66_s21 }
   0xe   :  { %v47_v5 = vrot.slane %v44_v2, 6  ;;  %v48_v6 = vrot.slane %v45_v3, 4  ;;  %v49_v7 = vrot.slane %v46_v4, 2 }
  0x10   :  { %v51_v9 = vsel %vm50_vm0, %v43_v1, %v47_v5  ;;  %v53_v10 = vsel %vm52_vm1, %v48_v6, %v49_v7 }
  0x11   :  { %v55_v11 = vsel %vm54_vm2, %v51_v9, %v53_v10 }
  0x12   :  { %v57_v12 = vadd.f32 %v55_v11, %v40_v8 }
  0x14   :  { %58 = vst [vmem:[#allocation7] sm:$0xff] %v57_v12 }
  0x15   :  { %69 = dma.vmem_to_hbm [thread:$0]  %s65_s1, 128, %s67_s21, [#allocation4]  }
  0x16   :  { %156 = dma.done.wait [#allocation4], 128  }
  0x17   :  { %157 = vsyncadd [#allocation4], 4294967168 }
  0x18   :  { %74 = vsyncpa [#allocation3], 1 }
  0x19   :  { %75 = vsyncpa [#allocation6], 1 }
  0x1a   :  { %76 = vsyncpa [#allocation4], 1 }

</bundles_post_ra>
